<compile_context>
chip_gen: v6e
topology: v6e:2x2x1
jax: 0.10.0
libtpu: 0.0.40
codegen_flags: <defaults>
</compile_context>

<pallas_src>
import functools
import math

import jax
import jax.numpy as jnp
from jax.experimental import pallas as pl
from jax.experimental.pallas import tpu as pltpu

VMEM_LIMIT = 32 * 1024 * 1024  # safe on v5e/v6e/v7x; tiles below stay well under it


def _pick_tile(dim, preferred, align):
    """Largest multiple of `align` <= `preferred` that divides `dim`;
    the full dim if it is already <= `preferred` (keeps the (8,128) rule)."""
    if dim <= preferred:
        return dim
    t = (preferred // align) * align
    while t >= align:
        if dim % t == 0:
            return t
        t -= align
    return dim


# --------------------------- tiled matmul (+bias, +GELU) ----------------------
def _matmul_bias_kernel(x_ref, w_ref, b_ref, o_ref, acc_ref, *, activation):
    k = pl.program_id(2)

    @pl.when(k == 0)
    def _():
        acc_ref[...] = jnp.zeros_like(acc_ref)

    acc_ref[...] += jnp.dot(x_ref[...], w_ref[...],
                            preferred_element_type=jnp.float32)

    @pl.when(k == pl.num_programs(2) - 1)
    def _():
        y = acc_ref[...] + b_ref[...]
        if activation == "gelu":
            # TODO(synk): HF XLM-R uses exact erf GELU; tanh approximation used
            # here to stay on the guaranteed Mosaic-lowerable EUP path.
            y = jax.nn.gelu(y)
        o_ref[...] = y.astype(o_ref.dtype)


def matmul_bias(x, w, b, activation=None, *, tm, tn, tk):
    M, K = x.shape
    N = w.shape[1]
    kernel = functools.partial(_matmul_bias_kernel, activation=activation)
    return pl.pallas_call(
        kernel,
        out_shape=jax.ShapeDtypeStruct((M, N), x.dtype),
        grid_spec=pltpu.PrefetchScalarGridSpec(
            num_scalar_prefetch=0,
            grid=(M // tm, N // tn, K // tk),
            in_specs=[
                pl.BlockSpec((tm, tk), lambda i, j, k: (i, k)),
                pl.BlockSpec((tk, tn), lambda i, j, k: (k, j)),
                pl.BlockSpec((1, tn), lambda i, j, k: (0, j)),
            ],
            out_specs=pl.BlockSpec((tm, tn), lambda i, j, k: (i, j)),
            scratch_shapes=[pltpu.VMEM((tm, tn), jnp.float32)],
        ),
        compiler_params=pltpu.CompilerParams(
            dimension_semantics=("parallel", "parallel", "arbitrary"),
            vmem_limit_bytes=VMEM_LIMIT),
    )(x, w, b)


# ---------------- tiled matmul + bias + residual + post-LayerNorm -------------
def _matmul_res_ln_kernel(x_ref, w_ref, b_ref, res_ref, g_ref, be_ref,
                          o_ref, acc_ref):
    k = pl.program_id(1)

    @pl.when(k == 0)
    def _():
        acc_ref[...] = jnp.zeros_like(acc_ref)

    acc_ref[...] += jnp.dot(x_ref[...], w_ref[...],
                            preferred_element_type=jnp.float32)

    @pl.when(k == pl.num_programs(1) - 1)
    def _():
        y = acc_ref[...] + b_ref[...] + res_ref[...].astype(jnp.float32)
        mu = jnp.mean(y, axis=-1, keepdims=True)
        var = jnp.mean((y - mu) ** 2, axis=-1, keepdims=True)
        y = (y - mu) * jax.lax.rsqrt(var + 1e-5)
        y = y * g_ref[...] + be_ref[...]
        o_ref[...] = y.astype(o_ref.dtype)


def matmul_res_ln(x, w, b, res, gamma, beta, *, tm, tk):
    M, K = x.shape
    H = w.shape[1]
    return pl.pallas_call(
        _matmul_res_ln_kernel,
        out_shape=jax.ShapeDtypeStruct((M, H), res.dtype),
        grid_spec=pltpu.PrefetchScalarGridSpec(
            num_scalar_prefetch=0,
            grid=(M // tm, K // tk),
            in_specs=[
                pl.BlockSpec((tm, tk), lambda i, k: (i, k)),
                pl.BlockSpec((tk, H), lambda i, k: (k, 0)),
                pl.BlockSpec((1, H), lambda i, k: (0, 0)),
                pl.BlockSpec((tm, H), lambda i, k: (i, 0)),
                pl.BlockSpec((1, H), lambda i, k: (0, 0)),
                pl.BlockSpec((1, H), lambda i, k: (0, 0)),
            ],
            out_specs=pl.BlockSpec((tm, H), lambda i, k: (i, 0)),
            scratch_shapes=[pltpu.VMEM((tm, H), jnp.float32)],
        ),
        compiler_params=pltpu.CompilerParams(
            dimension_semantics=("parallel", "arbitrary"),
            vmem_limit_bytes=VMEM_LIMIT),
    )(x, w, b, res, gamma, beta)


# ------------------------------ standalone layernorm --------------------------
def _ln_kernel(x_ref, g_ref, b_ref, o_ref):
    x = x_ref[...].astype(jnp.float32)
    mu = jnp.mean(x, axis=-1, keepdims=True)
    var = jnp.mean((x - mu) ** 2, axis=-1, keepdims=True)
    y = (x - mu) * jax.lax.rsqrt(var + 1e-5) * g_ref[...] + b_ref[...]
    o_ref[...] = y.astype(o_ref.dtype)


def layernorm(x, g, b):
    M, H = x.shape
    tm = _pick_tile(M, 256, 8)
    return pl.pallas_call(
        _ln_kernel,
        out_shape=jax.ShapeDtypeStruct((M, H), x.dtype),
        grid_spec=pltpu.PrefetchScalarGridSpec(
            num_scalar_prefetch=0,
            grid=(M // tm,),
            in_specs=[pl.BlockSpec((tm, H), lambda i: (i, 0)),
                      pl.BlockSpec((1, H), lambda i: (0, 0)),
                      pl.BlockSpec((1, H), lambda i: (0, 0))],
            out_specs=pl.BlockSpec((tm, H), lambda i: (i, 0)),
        ),
        compiler_params=pltpu.CompilerParams(
            dimension_semantics=("parallel",), vmem_limit_bytes=VMEM_LIMIT),
    )(x, g, b)


# --------------------------- flash-style self-attention -----------------------
def _flash_attn_kernel(q_ref, k_ref, v_ref, mask_ref, o_ref,
                       m_scr, l_scr, acc_scr, *, n_heads, dh, scale):
    ki = pl.program_id(2)

    @pl.when(ki == 0)
    def _():
        m_scr[...] = jnp.full_like(m_scr, -jnp.inf)
        l_scr[...] = jnp.zeros_like(l_scr)
        acc_scr[...] = jnp.zeros_like(acc_scr)

    mask = mask_ref[0]  # [1, tkv] additive (0 / -1e9), f32

    # Static unroll over heads: lane-dense [.., H] blocks, heads are static
    # column windows (no glue transposes, no [S,S] score tensor).
    for h in range(n_heads):
        q_h = q_ref[0, :, h * dh:(h + 1) * dh]   # [tq, dh] bf16
        k_h = k_ref[0, :, h * dh:(h + 1) * dh]   # [tkv, dh]
        v_h = v_ref[0, :, h * dh:(h + 1) * dh]   # [tkv, dh]
        s = jax.lax.dot_general(q_h, k_h, (((1,), (1,)), ((), ())),
                                preferred_element_type=jnp.float32) * scale
        s = s + mask                              # [tq, tkv]
        m_prev = m_scr[h]
        m_new = jnp.maximum(m_prev, jnp.max(s, axis=-1, keepdims=True))
        alpha = jnp.exp(m_prev - m_new)
        p = jnp.exp(s - m_new)
        l_scr[h] = alpha * l_scr[h] + jnp.sum(p, axis=-1, keepdims=True)
        acc_scr[h] = alpha * acc_scr[h] + jnp.dot(
            p.astype(v_h.dtype), v_h, preferred_element_type=jnp.float32)
        m_scr[h] = m_new

    @pl.when(ki == pl.num_programs(2) - 1)
    def _():
        for h in range(n_heads):
            out_h = acc_scr[h] * pl.reciprocal(l_scr[h], approx=True)
            o_ref[0, :, h * dh:(h + 1) * dh] = out_h.astype(o_ref.dtype)


def flash_attention(q, k, v, add_mask, *, n_heads, tq, tkv):
    B, S, H = q.shape
    dh = H // n_heads
    kernel = functools.partial(_flash_attn_kernel, n_heads=n_heads, dh=dh,
                               scale=1.0 / math.sqrt(dh))
    return pl.pallas_call(
        kernel,
        out_shape=jax.ShapeDtypeStruct((B, S, H), q.dtype),
        grid_spec=pltpu.PrefetchScalarGridSpec(
            num_scalar_prefetch=0,
            grid=(B, S // tq, S // tkv),
            in_specs=[
                pl.BlockSpec((1, tq, H), lambda b, qi, ki: (b, qi, 0)),
                pl.BlockSpec((1, tkv, H), lambda b, qi, ki: (b, ki, 0)),
                pl.BlockSpec((1, tkv, H), lambda b, qi, ki: (b, ki, 0)),
                pl.BlockSpec((1, 1, tkv), lambda b, qi, ki: (b, 0, ki)),
            ],
            out_specs=pl.BlockSpec((1, tq, H), lambda b, qi, ki: (b, qi, 0)),
            scratch_shapes=[
                pltpu.VMEM((n_heads, tq, 1), jnp.float32),   # running max m
                pltpu.VMEM((n_heads, tq, 1), jnp.float32),   # running sum l
                pltpu.VMEM((n_heads, tq, dh), jnp.float32),  # output acc
            ],
        ),
        compiler_params=pltpu.CompilerParams(
            dimension_semantics=("parallel", "parallel", "arbitrary"),
            vmem_limit_bytes=VMEM_LIMIT),
    )(q, k, v, add_mask)


# ------------------------- fused mean-pool + classifier -----------------------
def _pool_clf_kernel(h_ref, w_ref, b_ref, o_ref, acc_ref, *, seq_len):
    si = pl.program_id(0)

    @pl.when(si == 0)
    def _():
        acc_ref[...] = jnp.zeros_like(acc_ref)

    acc_ref[...] += jnp.sum(h_ref[...].astype(jnp.float32), axis=1)  # [B, H]

    @pl.when(si == pl.num_programs(0) - 1)
    def _():
        # torch.mean(last_hidden_state, dim=1) -> dropout(identity, eval) -> Linear
        pooled = acc_ref[...] * (1.0 / seq_len)
        o_ref[...] = jnp.dot(pooled, w_ref[...],
                             preferred_element_type=jnp.float32) + b_ref[...]


def pool_and_classify(h_bsd, w, b):
    B, S, H = h_bsd.shape
    C = w.shape[1]
    ts = _pick_tile(S, 256, 8)
    kernel = functools.partial(_pool_clf_kernel, seq_len=S)
    return pl.pallas_call(
        kernel,
        out_shape=jax.ShapeDtypeStruct((B, C), jnp.float32),
        grid_spec=pltpu.PrefetchScalarGridSpec(
            num_scalar_prefetch=0,
            grid=(S // ts,),
            in_specs=[
                pl.BlockSpec((B, ts, H), lambda si: (0, si, 0)),
                pl.BlockSpec((H, C), lambda si: (0, 0)),
                pl.BlockSpec((1, C), lambda si: (0, 0)),
            ],
            out_specs=pl.BlockSpec((B, C), lambda si: (0, 0)),
            scratch_shapes=[pltpu.VMEM((B, H), jnp.float32)],
        ),
        compiler_params=pltpu.CompilerParams(
            dimension_semantics=("arbitrary",), vmem_limit_bytes=VMEM_LIMIT),
    )(h_bsd, w, b)


# ------------------------- synthetic parameter init ---------------------------
def init_params(key, vocab, max_pos, n_types, hidden, n_layers, ffn_dim, n_classes):
    def nrm(k, shape, scale=0.02, dtype=jnp.float32):
        return (scale * jax.random.normal(k, shape, dtype=jnp.float32)).astype(dtype)

    keys = jax.random.split(key, 4 + n_layers)
    params = {
        "word_emb": nrm(keys[0], (vocab, hidden)),
        "pos_emb": nrm(keys[1], (max_pos, hidden)),
        "type_emb": nrm(keys[2], (n_types, hidden)),
        "emb_ln_g": jnp.ones((1, hidden), jnp.float32),
        "emb_ln_b": jnp.zeros((1, hidden), jnp.float32),
        "layers": [],
    }
    for li in range(n_layers):
        lk = jax.random.split(keys[4 + li], 6)
        wq = nrm(lk[0], (hidden, hidden))
        wk = nrm(lk[1], (hidden, hidden))
        wv = nrm(lk[2], (hidden, hidden))
        params["layers"].append({
            # fused QKV weight [H, 3H], bf16 for the MXU
            "wqkv": jnp.concatenate([wq, wk, wv], axis=1).astype(jnp.bfloat16),
            "bqkv": jnp.zeros((1, 3 * hidden), jnp.float32),
            "wo": nrm(lk[3], (hidden, hidden), dtype=jnp.bfloat16),
            "bo": jnp.zeros((1, hidden), jnp.float32),
            "ln1_g": jnp.ones((1, hidden), jnp.float32),
            "ln1_b": jnp.zeros((1, hidden), jnp.float32),
            "w1": nrm(lk[4], (hidden, ffn_dim), dtype=jnp.bfloat16),
            "b1": jnp.zeros((1, ffn_dim), jnp.float32),
            "w2": nrm(lk[5], (ffn_dim, hidden), dtype=jnp.bfloat16),
            "b2": jnp.zeros((1, hidden), jnp.float32),
            "ln2_g": jnp.ones((1, hidden), jnp.float32),
            "ln2_b": jnp.zeros((1, hidden), jnp.float32),
        })
    ck = jax.random.split(keys[3], 2)
    # classifier weight stored as [hidden, num_classes] (transpose of torch Linear)
    params["clf_w"] = nrm(ck[0], (hidden, n_classes))
    params["clf_b"] = nrm(ck[1], (1, n_classes))
    return params


# ------------------------------- forward pass ---------------------------------
def xlmr_forward(params, sequences, attention_mask, tokens_type, *, n_heads):
    B, S = sequences.shape
    H = params["word_emb"].shape[1]
    M = B * S

    # embeddings (gather is glue) + embedding layernorm
    # TODO(synk): real RoBERTa positions are offset by padding_idx+1; plain arange here.
    emb = (params["word_emb"][sequences]
           + params["pos_emb"][jnp.arange(S)][None, :, :]
           + params["type_emb"][tokens_type])
    h = layernorm(emb.reshape(M, H).astype(jnp.bfloat16),
                  params["emb_ln_g"], params["emb_ln_b"])

    # HF-style additive attention mask: 0 where attended, -1e9 where padded
    add_mask = (1.0 - attention_mask.astype(jnp.float32))[:, None, :] * -1e9  # [B,1,S]

    tm = _pick_tile(M, 256, 8)
    tk_h = _pick_tile(H, 512, 128)
    tq = _pick_tile(S, 128, 8)
    tkv = _pick_tile(S, 128, 8)

    for lyr in params["layers"]:
        # fused QKV projection: one [M,H] @ [H,3H] tiled matmul
        qkv = matmul_bias(h, lyr["wqkv"], lyr["bqkv"],
                          tm=tm, tn=_pick_tile(3 * H, 512, 128), tk=tk_h)
        q = qkv[:, :H].reshape(B, S, H)
        k = qkv[:, H:2 * H].reshape(B, S, H)
        v = qkv[:, 2 * H:].reshape(B, S, H)

        ctx = flash_attention(q, k, v, add_mask,
                              n_heads=n_heads, tq=tq, tkv=tkv).reshape(M, H)

        # attention out-proj + residual + post-LN, fused
        h = matmul_res_ln(ctx, lyr["wo"], lyr["bo"], h,
                          lyr["ln1_g"], lyr["ln1_b"], tm=tm, tk=tk_h)

        # FFN: matmul + bias + GELU fused; second matmul + residual + post-LN fused
        g1 = matmul_bias(h, lyr["w1"], lyr["b1"], activation="gelu",
                         tm=tm, tn=_pick_tile(lyr["w1"].shape[1], 512, 128), tk=tk_h)
        h = matmul_res_ln(g1, lyr["w2"], lyr["b2"], h,
                          lyr["ln2_g"], lyr["ln2_b"],
                          tm=tm, tk=_pick_tile(lyr["w2"].shape[0], 512, 128))

    last_hidden_state = h.reshape(B, S, H)
    # TODO(synk): nn.Dropout is identity at inference; training-mode dropout not emulated.
    logits = pool_and_classify(last_hidden_state, params["clf_w"], params["clf_b"])
    return logits


# ----------------------------------- main --------------------------------------
if __name__ == "__main__":
    B, S = 2, 8
    HIDDEN, N_HEADS, N_LAYERS, FFN_DIM = 32, 4, 2, 64
    VOCAB, MAX_POS, N_TYPES, N_CLASSES = 100, 64, 2, 5

    key = jax.random.PRNGKey(0)
    pkey, dkey = jax.random.split(key)
    params = init_params(pkey, VOCAB, MAX_POS, N_TYPES, HIDDEN, N_LAYERS,
                         FFN_DIM, N_CLASSES)

    sequences = jax.random.randint(dkey, (B, S), 0, VOCAB, dtype=jnp.int32)
    attention_mask = jnp.array(
        [[1, 1, 1, 1, 1, 1, 1, 1],
         [1, 1, 1, 1, 1, 0, 0, 0]], dtype=jnp.int32)
    tokens_type = jnp.zeros((B, S), dtype=jnp.int32)

    logits = xlmr_forward(params, sequences, attention_mask, tokens_type,
                          n_heads=N_HEADS)
    logits = jax.block_until_ready(logits)
    assert logits.shape == (B, N_CLASSES) and logits.dtype == jnp.float32
    print("KERNEL_OK")
</pallas_src>

<mosaic_0001>
module attributes {stable_mosaic.version = 11 : i64} {
  func.func @_ln_kernel(%arg0: i32, %arg1: memref<16x32xbf16, #tpu.memory_space<vmem>>, %arg2: memref<1x32xf32, #tpu.memory_space<vmem>>, %arg3: memref<1x32xf32, #tpu.memory_space<vmem>>, %arg4: memref<16x32xbf16, #tpu.memory_space<vmem>>) attributes {dimension_semantics = [#tpu.dimension_semantics<parallel>], iteration_bounds = array<i64: 1>, scalar_prefetch = 0 : i64, scratch_operands = 0 : i64, tpu.core_type = #tpu.core_type<tc>, window_params = [{transform_indices = @transform_0, window_bounds = array<i64: 16, 32>}, {pipeline_mode = #tpu.pipeline_mode<synchronous>, transform_indices = @transform_1, window_bounds = array<i64: 1, 32>}, {pipeline_mode = #tpu.pipeline_mode<synchronous>, transform_indices = @transform_2, window_bounds = array<i64: 1, 32>}, {transform_indices = @transform_3, window_bounds = array<i64: 16, 32>}]} {
    %c0 = arith.constant 0 : index
    %c0_0 = arith.constant 0 : index
    %0 = vector.load %arg1[%c0, %c0_0] : memref<16x32xbf16, #tpu.memory_space<vmem>>, vector<16x32xbf16>
    %1 = arith.extf %0 : vector<16x32xbf16> to vector<16x32xf32>
    %cst = arith.constant dense<0.000000e+00> : vector<16xf32>
    %2 = vector.multi_reduction <add>, %1, %cst [1] : vector<16x32xf32> to vector<16xf32>
    %3 = vector.shape_cast %2 : vector<16xf32> to vector<16x1xf32>
    %cst_1 = arith.constant 3.200000e+01 : f32
    %4 = vector.broadcast %cst_1 : f32 to vector<16x1xf32>
    %5 = arith.divf %3, %4 : vector<16x1xf32>
    %6 = vector.broadcast %5 : vector<16x1xf32> to vector<16x32xf32>
    %7 = arith.subf %1, %6 : vector<16x32xf32>
    %8 = arith.mulf %7, %7 : vector<16x32xf32>
    %cst_2 = arith.constant dense<0.000000e+00> : vector<16xf32>
    %9 = vector.multi_reduction <add>, %8, %cst_2 [1] : vector<16x32xf32> to vector<16xf32>
    %10 = vector.shape_cast %9 : vector<16xf32> to vector<16x1xf32>
    %cst_3 = arith.constant 3.200000e+01 : f32
    %11 = vector.broadcast %cst_3 : f32 to vector<16x1xf32>
    %12 = arith.divf %10, %11 : vector<16x1xf32>
    %13 = vector.broadcast %5 : vector<16x1xf32> to vector<16x32xf32>
    %14 = arith.subf %1, %13 : vector<16x32xf32>
    %cst_4 = arith.constant 9.99999974E-6 : f32
    %15 = vector.broadcast %cst_4 : f32 to vector<16x1xf32>
    %16 = arith.addf %12, %15 : vector<16x1xf32>
    %17 = math.rsqrt %16 : vector<16x1xf32>
    %18 = vector.broadcast %17 : vector<16x1xf32> to vector<16x32xf32>
    %19 = arith.mulf %14, %18 : vector<16x32xf32>
    %c0_5 = arith.constant 0 : index
    %c0_6 = arith.constant 0 : index
    %20 = vector.load %arg2[%c0_5, %c0_6] : memref<1x32xf32, #tpu.memory_space<vmem>>, vector<1x32xf32>
    %21 = vector.broadcast %20 : vector<1x32xf32> to vector<16x32xf32>
    %22 = arith.mulf %19, %21 : vector<16x32xf32>
    %c0_7 = arith.constant 0 : index
    %c0_8 = arith.constant 0 : index
    %23 = vector.load %arg3[%c0_7, %c0_8] : memref<1x32xf32, #tpu.memory_space<vmem>>, vector<1x32xf32>
    %24 = vector.broadcast %23 : vector<1x32xf32> to vector<16x32xf32>
    %25 = arith.addf %22, %24 : vector<16x32xf32>
    %26 = arith.truncf %25 : vector<16x32xf32> to vector<16x32xbf16>
    %c0_9 = arith.constant 0 : index
    %c0_10 = arith.constant 0 : index
    %27 = vector.load %arg4[%c0_9, %c0_10] : memref<16x32xbf16, #tpu.memory_space<vmem>>, vector<16x32xbf16>
    tpu.vector_store %arg4[%c0_9, %c0_10], %26 {strides = array<i32>} : memref<16x32xbf16, #tpu.memory_space<vmem>>, vector<16x32xbf16>,
    return
  }
  func.func @transform_0(%arg0: i32) -> (i32, i32) {
    %c0_i32 = arith.constant 0 : i32
    %c0_i32_0 = arith.constant 0 : i32
    return %arg0, %c0_i32 : i32, i32
  }
  func.func @transform_1(%arg0: i32) -> (i32, i32) {
    %c0_i32 = arith.constant 0 : i32
    %c0_i32_0 = arith.constant 0 : i32
    %c0_i32_1 = arith.constant 0 : i32
    return %c0_i32, %c0_i32_0 : i32, i32
  }
  func.func @transform_2(%arg0: i32) -> (i32, i32) {
    %c0_i32 = arith.constant 0 : i32
    %c0_i32_0 = arith.constant 0 : i32
    %c0_i32_1 = arith.constant 0 : i32
    return %c0_i32, %c0_i32_0 : i32, i32
  }
  func.func @transform_3(%arg0: i32) -> (i32, i32) {
    %c0_i32 = arith.constant 0 : i32
    %c0_i32_0 = arith.constant 0 : i32
    return %arg0, %c0_i32 : i32, i32
  }
}

</mosaic_0001>

<bundles_post_ra>
// kernel: tpu_custom_call.1
= control target key start
LH: loop header
LB: loop body
LE: loop exit
PB: predicated region body
PF: predicated region fallthrough
CT: control target
= control target key end

     0   :  { %8 = vsyncpa [#allocation3], 0  ;;  %s215_s0 = inlined_call_operand.hbm [shape: bf16[16,32], index: 0, kind: input, shape index: {}]   ;;  %s216_s1 = inlined_call_operand.vmem [shape: f32[1,32], index: 1, kind: input, shape index: {}]   ;;  %s217_s2 = inlined_call_operand.vmem [shape: f32[1,32], index: 2, kind: input, shape index: {}]   ;;  %s218_s3 = inlined_call_operand.hbm [shape: bf16[16,32], index: 3, kind: output, shape index: {}]  }
   0x1   :  { %9 = vsyncpa [#allocation4], 0  ;;  %s169_s12 = smov [#allocation2]  }
   0x2   :  { %s15_s13 = sshll.u32 %s169_s12, 4  ;;  %s16_s13 = int_to_ptr.vmem [resolvable:$true] %s15_s13 }
   0x3   :  { %s133_s14 = scalar_lea.vmem %s16_s13, 128  ;;  %p138_p1 = scmp.lt.s32.totalorder %s16_s13, %s16_s13 }
   0x4   :  { %p134_p0 = scmp.ne.s32.totalorder %s16_s13, %s133_s14  ;;  %p139_p2 = scmp.lt.s32.totalorder %s133_s14, %s133_s14 }
   0x6   :  { %p140_p3 = por %p139_p2, %p138_p1 }
   0x8   :  { %p141_p4 = pnand %p140_p3, %p134_p0 }
   0xa   :  { %144 = shalt.err (!%p141_p4)
}
   0xb   :  { %s170_s15 = smov 64   ;;  %s171_s16 = smov 4  }
   0xc   :  { %21 = dma.hbm_to_vmem [thread:$0]  %s215_s0, 128, %s16_s13, [#allocation3], %s170_s15, %s170_s15, %s171_s16  }
   0xd   :  { %165 = dma.done.wait [#allocation3], 128  }
   0xe   :  { %166 = vsyncadd [#allocation3], 4294967168  ;;  %v114_v0 = vld [vmem:[#allocation2] sm:$0xff]   ;;  %vm33_vm0 = vcmask 261120   ;;  %vm87_vm1 = vcmask 257024   ;;  %s172_s22 = smov [#allocation5]  }
   0xf   :  { %v115_v1 = vunpack.c.l.bf16 %v114_v0  ;;  %v116_v2 = vunpack.c.h.bf16 %v114_v0  ;;  %v107_v22 = vld [vmem:[%s216_s1] ss:$0 sm:$0xff]  ;;  %s95_s23 = sshll.u32 %s172_s22, 4  ;;  %s96_s23 = int_to_ptr.vmem [resolvable:$true] %s95_s23 }
  0x10   :  { %v108_v24 = vld [vmem:[%s217_s2] ss:$0 sm:$0xff]  ;;  %s145_s1 = scalar_lea.vmem %s96_s23, 128  ;;  %p150_p6 = scmp.lt.s32.totalorder %s96_s23, %s96_s23 }
  0x11   :  { %v34_v3 = vsel %vm33_vm0, %v115_v1, 0.0  ;;  %v37_v4 = vsel %vm33_vm0, %v116_v2, 0.0  ;;  %p146_p5 = scmp.ne.s32.totalorder %s96_s23, %s145_s1  ;;  %p151_p7 = scmp.lt.s32.totalorder %s145_s1, %s145_s1 }
  0x12   :  { %35 = vadd.xlane.f32.xlu0 %v34_v3 }
  0x13   :  { %p152_p8 = por %p151_p7, %p150_p6 }
  0x15   :  { %p153_p9 = pnand %p152_p8, %p146_p5 }
  0x16   :  { %38 = vadd.xlane.f32.xlu0 %v37_v4 }
  0x9b   :  { %v36_v5 = vpop.xlane.xlu0 %35 }
  0x9c   :  { %v41_v6 = vmul.f32 0.03125, %v36_v5 }
  0x9e   :  { %v43_v7 = vsub.f32 %v115_v1, %v41_v6 }
  0x9f   :  { %v39_v8 = vpop.xlane.xlu0 %38 }
  0xa0   :  { %v42_v9 = vmul.f32 0.03125, %v39_v8  ;;  %v45_v10 = vmul.f32 %v43_v7, %v43_v7 }
  0xa2   :  { %v44_v11 = vsub.f32 %v116_v2, %v42_v9  ;;  %v47_v12 = vsel %vm33_vm0, %v45_v10, 0.0 }
  0xa3   :  { %48 = vadd.xlane.f32.xlu1 %v47_v12 }
  0xa4   :  { %v46_v13 = vmul.f32 %v44_v11, %v44_v11 }
  0xa6   :  { %v50_v14 = vsel %vm33_vm0, %v46_v13, 0.0 }
  0xa7   :  { %51 = vadd.xlane.f32.xlu1 %v50_v14 }
 0x12c   :  { %v49_v15 = vpop.xlane.xlu1 %48 }
 0x12d   :  { %v53_v16 = vmul.f32 0.03125, %v49_v15 }
 0x12f   :  { %v55_v17 = vadd.f32 1e-05, %v53_v16 }
 0x130   :  { %v52_v18 = vpop.xlane.xlu1 %51 }
 0x131   :  { %121 = vrsqrt.f32 %v55_v17  ;;  %v54_v19 = vmul.f32 0.03125, %v52_v18 }
 0x133   :  { %v56_v20 = vadd.f32 1e-05, %v54_v19 }
 0x135   :  { %123 = vrsqrt.f32 %v56_v20 }
 0x13e   :  { %v122_v21 = vpop.eup %121 }
 0x13f   :  { %v59_v23 = vmul.f32 %v122_v21, %v43_v7 }
 0x141   :  { %v68_v25 = vmul.f32 %v107_v22, %v59_v23 }
 0x142   :  { %v124_v26 = vpop.eup %123 }
 0x143   :  { %v60_v27 = vmul.f32 %v124_v26, %v44_v11  ;;  %v77_v28 = vadd.f32 %v108_v24, %v68_v25 }
 0x145   :  { %v69_v29 = vmul.f32 %v107_v22, %v60_v27  ;;  %v111_v30 = vpack.c.bf16 %v77_v28, %v77_v28 }
 0x147   :  { %v78_v31 = vadd.f32 %v108_v24, %v69_v29  ;;  %88 = vst.msk [vmem:[#allocation5] sm:$0xf] %vm87_vm1, %v111_v30 }
 0x149   :  { %v112_v32 = vpack.c.bf16 %v78_v31, %v78_v31 }
 0x14b   :  { %89 = vst.msk [vmem:[#allocation5 + $0x4] sm:$0xf] %vm87_vm1, %v112_v32 }
 0x14c   :  { %156 = shalt.err (!%p153_p9)
}
 0x14d   :  { %101 = dma.vmem_to_hbm [thread:$0]  %s96_s23, 128, %s218_s3, [#allocation4], %s170_s15, %s170_s15, %s171_s16  }
 0x14e   :  { %167 = dma.done.wait [#allocation4], 128  }
 0x14f   :  { %168 = vsyncadd [#allocation4], 4294967168 }
 0x150   :  { %105 = vsyncpa [#allocation3], 1 }
 0x151   :  { %106 = vsyncpa [#allocation4], 1 }

</bundles_post_ra>
